<compile_context>
chip_gen: v7x
topology: tpu7x:2x2x1
jax: 0.10.0
libtpu: 0.0.40
codegen_flags: <defaults>
</compile_context>

<pallas_src>
import jax
import jax.numpy as jnp
from jax.experimental import pallas as pl
from jax.experimental.pallas import tpu as pltpu


def _scaled_conv1x1_kernel(w_ref, x_ref, o_ref):
    # w_ref: (1, O_pad, C)   per-batch pre-scaled 1x1-conv weight
    # x_ref: (1, C, T)       channel-major spatial tile of one batch element
    # o_ref: (1, O_pad, T)
    w = w_ref[0]
    # Cast the activation only at the MXU input (no-op for the f32 path; keeps
    # elementwise work in f32, which matters on v5e).
    x = x_ref[0].astype(w_ref.dtype)
    o_ref[0] = jnp.dot(w, x, preferred_element_type=jnp.float32).astype(o_ref.dtype)


def scale_conv1x1(x_nchw, scale_nc11, weight_oihw, *, tile_hw=None, use_bf16=False):
    """Conv2d(1x1, bias=False)(x * scale) with NCHW in / NCHW out semantics."""
    N, C, H, W = x_nchw.shape
    O = weight_oihw.shape[0]
    HW = H * W

    # NCHW -> (N, C, H*W): contiguous, no transpose / no HBM round trip.
    x = x_nchw.reshape(N, C, HW)

    # Fold the scale into the weight:  (W * s[n]) @ x  ==  W @ (s[n] * x).
    w = weight_oihw.reshape(O, C)
    ws = w[None, :, :] * scale_nc11.reshape(N, 1, C)          # (N, O, C), tiny
    if use_bf16:
        ws = ws.astype(jnp.bfloat16)                          # MXU-native on v6e/v7x

    # Output channels live in the sublane dim -> only need a multiple of 8.
    O_pad = ((O + 7) // 8) * 8
    if O_pad != O:
        ws = jnp.pad(ws, ((0, 0), (0, O_pad - O), (0, 0)))

    # Spatial (lane) tiling policy.
    if tile_hw is None:
        tile_hw = HW if HW <= 2048 else 512
    if tile_hw < HW:
        tile_hw = max(128, (tile_hw // 128) * 128)            # lane-dense tiles
    else:
        tile_hw = HW                                          # single block
    grid = (N, pl.cdiv(HW, tile_hw))

    out = pl.pallas_call(
        _scaled_conv1x1_kernel,
        out_shape=jax.ShapeDtypeStruct((N, O_pad, HW), x.dtype),
        grid_spec=pltpu.PrefetchScalarGridSpec(
            num_scalar_prefetch=0,
            grid=grid,
            in_specs=[
                pl.BlockSpec((1, O_pad, C), lambda n, t: (n, 0, 0)),
                pl.BlockSpec((1, C, tile_hw), lambda n, t: (n, 0, t)),
            ],
            out_specs=pl.BlockSpec((1, O_pad, tile_hw), lambda n, t: (n, 0, t)),
        ),
        compiler_params=pltpu.CompilerParams(
            dimension_semantics=("parallel", "parallel"),
        ),
    )(ws, x)

    out = out[:, :O, :]
    return out.reshape(N, O, H, W)


if __name__ == "__main__":
    key = jax.random.PRNGKey(0)
    k_x, k_s, k_w = jax.random.split(key, 3)

    # Small shapes consistent with the module: 288 -> 80 channels, batch 1,
    # reduced spatial size (16x16 instead of 28x28 so HW >= 128 lanes).
    N, C_in, H, W = 1, 288, 16, 16
    C_out = 80

    x164 = jax.random.normal(k_x, (N, C_in, H, W), dtype=jnp.float32)
    x169 = jax.random.normal(k_s, (N, C_in, 1, 1), dtype=jnp.float32)
    weight = (
        jax.random.normal(k_w, (C_out, C_in, 1, 1), dtype=jnp.float32)
        / jnp.sqrt(C_in)
    )

    ref = jnp.einsum("nchw,oc->nohw", x164 * x169, weight.reshape(C_out, C_in))

    # 1) Default config: single lane-dense block per batch, f32 MXU path.
    out = jax.block_until_ready(scale_conv1x1(x164, x169, weight))
    assert out.shape == (N, C_out, H, W)
    assert jnp.allclose(out, ref, atol=1e-4, rtol=1e-4)

    # 2) Tiled spatial grid (multi-step path used at larger spatial sizes).
    out_t = jax.block_until_ready(scale_conv1x1(x164, x169, weight, tile_hw=128))
    assert jnp.allclose(out_t, ref, atol=1e-4, rtol=1e-4)

    # 3) Ragged spatial size (HW not a multiple of the tile -- same situation
    #    as the module's real 28x28=784 with 512-wide tiles).
    Hr = Wr = 12
    x_r = jax.random.normal(k_x, (N, C_in, Hr, Wr), dtype=jnp.float32)
    ref_r = jnp.einsum("nchw,oc->nohw", x_r * x169, weight.reshape(C_out, C_in))
    out_r = jax.block_until_ready(scale_conv1x1(x_r, x169, weight, tile_hw=128))
    assert out_r.shape == (N, C_out, Hr, Wr)
    assert jnp.allclose(out_r, ref_r, atol=1e-4, rtol=1e-4)

    # 4) bf16 MXU path (v6e/v7x), f32 accumulation -> looser tolerance.
    out_bf = jax.block_until_ready(scale_conv1x1(x164, x169, weight, use_bf16=True))
    assert jnp.allclose(out_bf, ref, atol=5e-2, rtol=5e-2)

    print("KERNEL_OK")
</pallas_src>

<mosaic_0001>
module attributes {stable_mosaic.version = 11 : i64} {
  func.func @_scaled_conv1x1_kernel(%arg0: i32, %arg1: i32, %arg2: memref<1x80x288xf32, #tpu.memory_space<vmem>>, %arg3: memref<1x288x256xf32, #tpu.memory_space<vmem>>, %arg4: memref<1x80x256xf32, #tpu.memory_space<vmem>>) attributes {dimension_semantics = [#tpu.dimension_semantics<parallel>, #tpu.dimension_semantics<parallel>], iteration_bounds = array<i64: 1, 1>, scalar_prefetch = 0 : i64, scratch_operands = 0 : i64, tpu.core_type = #tpu.core_type<tc>, window_params = [{transform_indices = @transform_0, window_bounds = array<i64: 1, 80, 288>}, {transform_indices = @transform_1, window_bounds = array<i64: 1, 288, 256>}, {transform_indices = @transform_2, window_bounds = array<i64: 1, 80, 256>}]} {
    %c0 = arith.constant 0 : index
    %c0_0 = arith.constant 0 : index
    %c0_1 = arith.constant 0 : index
    %0 = vector.load %arg2[%c0, %c0_0, %c0_1] : memref<1x80x288xf32, #tpu.memory_space<vmem>>, vector<1x80x288xf32>
    %1 = vector.shape_cast %0 : vector<1x80x288xf32> to vector<80x288xf32>
    %c0_2 = arith.constant 0 : index
    %c0_3 = arith.constant 0 : index
    %c0_4 = arith.constant 0 : index
    %2 = vector.load %arg3[%c0_2, %c0_3, %c0_4] : memref<1x288x256xf32, #tpu.memory_space<vmem>>, vector<1x288x256xf32>
    %3 = vector.shape_cast %2 : vector<1x288x256xf32> to vector<288x256xf32>
    %cst = arith.constant dense<0.000000e+00> : vector<80x256xf32>
    %4 = tpu.matmul %1, %3, %cst {dimension_numbers = #tpu.dot_dimension_numbers<[1], [0], [0], [1], [0, 0, 1, 1], [], []>} : vector<80x288xf32>, vector<288x256xf32>, vector<80x256xf32> -> vector<80x256xf32>
    %c0_5 = arith.constant 0 : index
    %c0_6 = arith.constant 0 : index
    %c0_7 = arith.constant 0 : index
    %5 = vector.load %arg4[%c0_5, %c0_6, %c0_7] : memref<1x80x256xf32, #tpu.memory_space<vmem>>, vector<1x80x256xf32>
    %6 = vector.shape_cast %5 : vector<1x80x256xf32> to vector<80x256xf32>
    %7 = vector.shape_cast %4 : vector<80x256xf32> to vector<1x80x256xf32>
    tpu.vector_store %arg4[%c0_5, %c0_6, %c0_7], %7 {strides = array<i32>} : memref<1x80x256xf32, #tpu.memory_space<vmem>>, vector<1x80x256xf32>,
    return
  }
  func.func @transform_0(%arg0: i32, %arg1: i32) -> (i32, i32, i32) {
    %c0_i32 = arith.constant 0 : i32
    %c0_i32_0 = arith.constant 0 : i32
    %c0_i32_1 = arith.constant 0 : i32
    return %arg0, %c0_i32, %c0_i32_0 : i32, i32, i32
  }
  func.func @transform_1(%arg0: i32, %arg1: i32) -> (i32, i32, i32) {
    %c0_i32 = arith.constant 0 : i32
    %c0_i32_0 = arith.constant 0 : i32
    return %arg0, %c0_i32, %arg1 : i32, i32, i32
  }
  func.func @transform_2(%arg0: i32, %arg1: i32) -> (i32, i32, i32) {
    %c0_i32 = arith.constant 0 : i32
    %c0_i32_0 = arith.constant 0 : i32
    return %arg0, %c0_i32, %arg1 : i32, i32, i32
  }
}

</mosaic_0001>

<bundles_post_ra>
// kernel: tpu_custom_call.1
= control target key start
LH: loop header
LB: loop body
LE: loop exit
PB: predicated region body
PF: predicated region fallthrough
CT: control target
= control target key end

     0   :  { %7 = vsyncpa [#allocation3], 0  ;;  %s728_s0 = inlined_call_operand.hbm [shape: f32[1,80,288], index: 0, kind: input, shape index: {}]   ;;  %s729_s1 = inlined_call_operand.hbm [shape: f32[1,288,256], index: 1, kind: input, shape index: {}]   ;;  %s730_s2 = inlined_call_operand.hbm [shape: f32[1,80,256], index: 2, kind: output, shape index: {}]  }
   0x1   :  { %8 = vsyncpa [#allocation6], 0 }
   0x2   :  { %9 = vsyncpa [#allocation4], 0  ;;  %s643_s9 = smov [#allocation2]   ;;  %s571_s13 = scalar_lea.hbm %s728_s0, 3840 }
   0x3   :  { %s15_s10 = sshll.u32 %s643_s9, 4  ;;  %p572_p0 = scmp.ne.s32.totalorder %s728_s0, %s571_s13  ;;  %s16_s10 = int_to_ptr.vmem [resolvable:$true] %s15_s10 }
   0x4   :  { %p575_p1 = scmp.lt.u32.totalorder %s571_s13, %s728_s0 }
   0x6   :  { %p577_p2 = pnand %p575_p1, %p572_p0 }
   0x8   :  { %580 = shalt.err (!%p577_p2)
}
   0x9   :  { %s581_s18 = scalar_lea.vmem %s16_s10, 3840  ;;  %p586_p4 = scmp.lt.s32.totalorder %s16_s10, %s16_s10 }
   0xa   :  { %p582_p3 = scmp.ne.s32.totalorder %s16_s10, %s581_s18  ;;  %p587_p5 = scmp.lt.s32.totalorder %s581_s18, %s581_s18 }
   0xc   :  { %p588_p6 = por %p587_p5, %p586_p4 }
   0xe   :  { %p589_p7 = pnand %p588_p6, %p582_p3 }
  0x10   :  { %592 = shalt.err (!%p589_p7)
}
  0x11   :  { %s644_s19 = smov 384   ;;  %s645_s20 = smov 24  }
  0x12   :  { %21 = dma.hbm_to_vmem [thread:$0]  %s728_s0, 3840, %s16_s10, [#allocation3], %s644_s19, %s644_s19, %s645_s20  }
  0x13   :  { %s646_s23 = smov [#allocation5]   ;;  %s593_s27 = scalar_lea.hbm %s729_s1, 9216 }
  0x14   :  { %s27_s24 = sshll.u32 %s646_s23, 4  ;;  %p594_p8 = scmp.ne.s32.totalorder %s729_s1, %s593_s27  ;;  %s28_s24 = int_to_ptr.vmem [resolvable:$true] %s27_s24 }
  0x15   :  { %p597_p9 = scmp.lt.u32.totalorder %s593_s27, %s729_s1 }
  0x17   :  { %p599_p10 = pnand %p597_p9, %p594_p8 }
  0x19   :  { %602 = shalt.err (!%p599_p10)
}
  0x1a   :  { %s603_s4 = scalar_lea.vmem %s28_s24, 9216  ;;  %p608_p12 = scmp.lt.s32.totalorder %s28_s24, %s28_s24 }
  0x1b   :  { %p604_p11 = scmp.ne.s32.totalorder %s28_s24, %s603_s4  ;;  %p609_p13 = scmp.lt.s32.totalorder %s603_s4, %s603_s4 }
  0x1d   :  { %p610_p0 = por %p609_p13, %p608_p12 }
  0x1f   :  { %p611_p1 = pnand %p610_p0, %p604_p11 }
  0x21   :  { %614 = shalt.err (!%p611_p1)
}
  0x22   :  { %s647_s0 = smov 256   ;;  %s648_s5 = smov 16  }
  0x23   :  { %33 = dma.hbm_to_vmem [thread:$0]  %s729_s1, 9216, %s28_s24, [#allocation6], %s647_s0, %s647_s0, %s648_s5  }
  0x24   :  { %637 = dma.done.wait [#allocation3], 3840  }
  0x25   :  { %638 = vsyncadd [#allocation3], 4294963456 }
  0x26   :  { %639 = dma.done.wait [#allocation6], 9216  }
  0x27   :  { %640 = vsyncadd [#allocation6], 4294958080  ;;  %v649_v0 = vmov 0.0   ;;  %v71_v1 = vld [vmem:[#allocation5 + $0x8] sm:$0xff]  ;;  %v73_v2 = vld [vmem:[#allocation5 + $0x18] sm:$0xff]  ;;  %vm142_vm0 = vcmask 261120  }
  0x28   :  { %362 = vmatprep.mubr.f32.mxu0 %v649_v0  ;;  %v70_v3 = vld [vmem:[#allocation5] sm:$0xff]  ;;  %v471_v4 = vpack.c.bf16 %v73_v2, %v71_v1  ;;  %v72_v5 = vld [vmem:[#allocation5 + $0x10] sm:$0xff]  ;;  %v75_v6 = vld [vmem:[#allocation5 + $0x28] sm:$0xff]  ;;  %s650_s1 = smov [#allocation7]  }
  0x29   :  { %v77_v7 = vld [vmem:[#allocation5 + $0x38] sm:$0xff]  ;;  %v473_v8 = vpack.c.bf16 %v72_v5, %v70_v3  ;;  %v74_v10 = vld [vmem:[#allocation5 + $0x20] sm:$0xff]  ;;  %v76_v11 = vld [vmem:[#allocation5 + $0x30] sm:$0xff]  ;;  %s448_s8 = sshll.u32 %s650_s1, 4  ;;  %s449_s8 = int_to_ptr.vmem [resolvable:$true] %s448_s8 }
  0x2a   :  { %v475_v9 = vpack.c.bf16 %v77_v7, %v75_v6  ;;  %v79_v12 = vld [vmem:[#allocation5 + $0x48] sm:$0xff]  ;;  %472 = vmatprep.subr.bf16.mxu1 %v471_v4  ;;  %v81_v13 = vld [vmem:[#allocation5 + $0x58] sm:$0xff]  ;;  %v477_v14 = vpack.c.bf16 %v76_v11, %v74_v10  ;;  %v78_v16 = vld [vmem:[#allocation5 + $0x40] sm:$0xff]  ;;  %s615_s9 = scalar_lea.vmem %s449_s8, 2560  ;;  %p620_p3 = scmp.lt.s32.totalorder %s449_s8, %s449_s8 }
  0x2b   :  { %474 = vmatpush1.bf16.msra.mxu1 %v473_v8  ;;  %v479_v15 = vpack.c.bf16 %v81_v13, %v79_v12  ;;  %v80_v17 = vld [vmem:[#allocation5 + $0x50] sm:$0xff]  ;;  %v83_v18 = vld [vmem:[#allocation5 + $0x68] sm:$0xff]  ;;  %v85_v19 = vld [vmem:[#allocation5 + $0x78] sm:$0xff]  ;;  %p616_p2 = scmp.ne.s32.totalorder %s449_s8, %s615_s9  ;;  %p621_p4 = scmp.lt.s32.totalorder %s615_s9, %s615_s9 }
  0x2c   :  { %476 = vmatprep.subr.bf16.mxu1 %v475_v9  ;;  %v481_v20 = vpack.c.bf16 %v80_v17, %v78_v16  ;;  %v483_v21 = vpack.c.bf16 %v85_v19, %v83_v18  ;;  %v82_v22 = vld [vmem:[#allocation5 + $0x60] sm:$0xff]  ;;  %v84_v23 = vld [vmem:[#allocation5 + $0x70] sm:$0xff]  ;;  %v87_v24 = vld [vmem:[#allocation5 + $0x88] sm:$0xff] }
  0x2d   :  { %v89_v25 = vld [vmem:[#allocation5 + $0x98] sm:$0xff]  ;;  %v485_v26 = vpack.c.bf16 %v84_v23, %v82_v22  ;;  %v86_v28 = vld [vmem:[#allocation5 + $0x80] sm:$0xff]  ;;  %v88_v29 = vld [vmem:[#allocation5 + $0x90] sm:$0xff]  ;;  %p622_p5 = por %p621_p4, %p620_p3 }
  0x2e   :  { %v487_v27 = vpack.c.bf16 %v89_v25, %v87_v24  ;;  %v91_v30 = vld [vmem:[#allocation5 + $0xa8] sm:$0xff]  ;;  %v93_v31 = vld [vmem:[#allocation5 + $0xb8] sm:$0xff]  ;;  %v489_v32 = vpack.c.bf16 %v88_v29, %v86_v28  ;;  %v90_v34 = vld [vmem:[#allocation5 + $0xa0] sm:$0xff] }
  0x2f   :  { %478 = vmatpush1.bf16.msra.mxu1 %v477_v14  ;;  %v491_v33 = vpack.c.bf16 %v93_v31, %v91_v30  ;;  %v92_v35 = vld [vmem:[#allocation5 + $0xb0] sm:$0xff]  ;;  %v95_v36 = vld [vmem:[#allocation5 + $0xc8] sm:$0xff]  ;;  %v97_v37 = vld [vmem:[#allocation5 + $0xd8] sm:$0xff]  ;;  %p623_p6 = pnand %p622_p5, %p616_p2 }
  0x30   :  { %480 = vmatprep.subr.bf16.mxu1 %v479_v15  ;;  %v135_v38 = vld [vmem:[#allocation5 + $0x208] sm:$0xff]  ;;  %v137_v39 = vld [vmem:[#allocation5 + $0x218] sm:$0xff]  ;;  %v493_v40 = vpack.c.bf16 %v92_v35, %v90_v34  ;;  %v94_v41 = vld [vmem:[#allocation5 + $0xc0] sm:$0xff]  ;;  %v495_v45 = vpack.c.bf16 %v97_v37, %v95_v36 }
  0x31   :  { %v535_v42 = vpack.c.bf16 %v137_v39, %v135_v38  ;;  %v134_v43 = vld [vmem:[#allocation5 + $0x200] sm:$0xff]  ;;  %v136_v44 = vld [vmem:[#allocation5 + $0x210] sm:$0xff]  ;;  %v139_v48 = vld [vmem:[#allocation5 + $0x228] sm:$0xff] }
  0x32   :  { %v96_v46 = vld [vmem:[#allocation5 + $0xd0] sm:$0xff]  ;;  %v537_v47 = vpack.c.bf16 %v136_v44, %v134_v43  ;;  %v141_v49 = vld [vmem:[#allocation5 + $0x238] sm:$0xff]  ;;  %v99_v50 = vld [vmem:[#allocation5 + $0xe8] sm:$0xff] }
  0x33   :  { %482 = vmatpush1.bf16.msra.mxu1 %v481_v20  ;;  %v101_v51 = vld [vmem:[#allocation5 + $0xf8] sm:$0xff]  ;;  %536 = vmatprep.subr.bf16.mxu0 %v535_v42  ;;  %v539_v52 = vpack.c.bf16 %v141_v49, %v139_v48  ;;  %v138_v53 = vld [vmem:[#allocation5 + $0x220] sm:$0xff]  ;;  %v140_v54 = vld [vmem:[#allocation5 + $0x230] sm:$0xff]  ;;  %v497_v55 = vpack.c.bf16 %v96_v46, %v94_v41 }
  0x34   :  { %484 = vmatprep.subr.bf16.mxu1 %v483_v21  ;;  %538 = vmatpush1.bf16.msra.mxu0 %v537_v47  ;;  %v541_v56 = vpack.c.bf16 %v140_v54, %v138_v53  ;;  %v41_v57 = vld [vmem:[#allocation2 + $0x8] sm:$0xff]  ;;  %v499_v58 = vpack.c.bf16 %v101_v51, %v99_v50  ;;  %v98_v59 = vld [vmem:[#allocation5 + $0xe0] sm:$0xff]  ;;  %v100_v60 = vld [vmem:[#allocation5 + $0xf0] sm:$0xff] }
  0x35   :  { %540 = vmatprep.subr.bf16.mxu0 %v539_v52  ;;  %237 = vmatprep.mubr.f32.mxu1 %v41_v57  ;;  %v103_v61 = vld [vmem:[#allocation5 + $0x108] sm:$0xff]  ;;  %v105_v62 = vld [vmem:[#allocation5 + $0x118] sm:$0xff]  ;;  %v42_v63 = vld [vmem:[#allocation2 + $0x10] sm:$0xff]  ;;  %v501_v1 = vpack.c.bf16 %v100_v60, %v98_v59 }
  0x36   :  { %v503_v2 = vpack.c.bf16 %v105_v62, %v103_v61  ;;  %v102_v3 = vld [vmem:[#allocation5 + $0x100] sm:$0xff]  ;;  %v104_v4 = vld [vmem:[#allocation5 + $0x110] sm:$0xff]  ;;  %v107_v5 = vld [vmem:[#allocation5 + $0x128] sm:$0xff] }
  0x37   :  { %486 = vmatpush1.bf16.msra.mxu1 %v485_v26  ;;  %v109_v6 = vld [vmem:[#allocation5 + $0x138] sm:$0xff]  ;;  %v505_v8 = vpack.c.bf16 %v104_v4, %v102_v3  ;;  %v106_v10 = vld [vmem:[#allocation5 + $0x120] sm:$0xff]  ;;  %v108_v11 = vld [vmem:[#allocation5 + $0x130] sm:$0xff] }
  0x38   :  { %488 = vmatprep.subr.bf16.mxu1 %v487_v27  ;;  %542 = vmatpush1.bf16.msra.mxu0 %v541_v56  ;;  %v45_v7 = vld [vmem:[#allocation2 + $0x28] sm:$0xff]  ;;  %v507_v9 = vpack.c.bf16 %v109_v6, %v107_v5  ;;  %v111_v12 = vld [vmem:[#allocation5 + $0x148] sm:$0xff]  ;;  %v48_v14 = vld [vmem:[#allocation2 + $0x40] sm:$0xff]  ;;  %v509_v15 = vpack.c.bf16 %v108_v11, %v106_v10 }
  0x39   :  { %v113_v13 = vld [vmem:[#allocation5 + $0x158] sm:$0xff]  ;;  %v110_v17 = vld [vmem:[#allocation5 + $0x140] sm:$0xff]  ;;  %v112_v18 = vld [vmem:[#allocation5 + $0x150] sm:$0xff] }
  0x3a   :  { %v511_v16 = vpack.c.bf16 %v113_v13, %v111_v12  ;;  %v115_v19 = vld [vmem:[#allocation5 + $0x168] sm:$0xff]  ;;  %v117_v20 = vld [vmem:[#allocation5 + $0x178] sm:$0xff]  ;;  %v513_v22 = vpack.c.bf16 %v112_v18, %v110_v17  ;;  %v114_v24 = vld [vmem:[#allocation5 + $0x160] sm:$0xff] }
  0x3b   :  { %490 = vmatpush1.bf16.msra.mxu1 %v489_v32  ;;  %461 = vmatmul.mubr.msk.f32.vlgmr.msra.gmra.mrb[0].mxu0 %vm142_vm0, %v42_v63  ;;  %v51_v21 = vld [vmem:[#allocation2 + $0x58] sm:$0xff]  ;;  %v515_v23 = vpack.c.bf16 %v117_v20, %v115_v19  ;;  %v116_v25 = vld [vmem:[#allocation5 + $0x170] sm:$0xff]  ;;  %v121_v27 = vld [vmem:[#allocation5 + $0x198] sm:$0xff] }
  0x3c   :  { %492 = vmatprep.subr.bf16.mxu1 %v491_v33  ;;  %368 = vmatprep.mubr.f32.mxu0 %v649_v0  ;;  %v119_v26 = vld [vmem:[#allocation5 + $0x188] sm:$0xff]  ;;  %v54_v28 = vld [vmem:[#allocation2 + $0x70] sm:$0xff]  ;;  %v517_v29 = vpack.c.bf16 %v116_v25, %v114_v24  ;;  %v120_v32 = vld [vmem:[#allocation5 + $0x190] sm:$0xff] }
  0x3d   :  { %v519_v30 = vpack.c.bf16 %v121_v27, %v119_v26  ;;  %v118_v31 = vld [vmem:[#allocation5 + $0x180] sm:$0xff]  ;;  %v123_v33 = vld [vmem:[#allocation5 + $0x1a8] sm:$0xff]  ;;  %v125_v34 = vld [vmem:[#allocation5 + $0x1b8] sm:$0xff] }
  0x3e   :  { %v57_v35 = vld [vmem:[#allocation2 + $0x88] sm:$0xff]  ;;  %v521_v36 = vpack.c.bf16 %v120_v32, %v118_v31  ;;  %v523_v37 = vpack.c.bf16 %v125_v34, %v123_v33  ;;  %v122_v38 = vld [vmem:[#allocation5 + $0x1a0] sm:$0xff]  ;;  %v124_v39 = vld [vmem:[#allocation5 + $0x1b0] sm:$0xff] }
  0x3f   :  { %494 = vmatpush1.bf16.msra.mxu1 %v493_v40  ;;  %462 = vmatmul.mubr.msk.f32.gmra.mrb[2].mxu0 %vm142_vm0, %v45_v7  ;;  %v127_v40 = vld [vmem:[#allocation5 + $0x1c8] sm:$0xff]  ;;  %v129_v41 = vld [vmem:[#allocation5 + $0x1d8] sm:$0xff]  ;;  %v60_v42 = vld [vmem:[#allocation2 + $0xa0] sm:$0xff]  ;;  %v525_v43 = vpack.c.bf16 %v124_v39, %v122_v38 }
  0x40   :  { %496 = vmatprep.subr.bf16.mxu1 %v495_v45  ;;  %374 = vmatprep.mubr.f32.mxu0 %v649_v0  ;;  %v527_v44 = vpack.c.bf16 %v129_v41, %v127_v40  ;;  %v126_v45 = vld [vmem:[#allocation5 + $0x1c0] sm:$0xff]  ;;  %v128_v46 = vld [vmem:[#allocation5 + $0x1d0] sm:$0xff]  ;;  %v131_v47 = vld [vmem:[#allocation5 + $0x1e8] sm:$0xff] }
  0x41   :  { %v133_v48 = vld [vmem:[#allocation5 + $0x1f8] sm:$0xff]  ;;  %v63_v49 = vld [vmem:[#allocation2 + $0xb8] sm:$0xff]  ;;  %v529_v50 = vpack.c.bf16 %v128_v46, %v126_v45  ;;  %v130_v52 = vld [vmem:[#allocation5 + $0x1e0] sm:$0xff] }
  0x42   :  { %v531_v51 = vpack.c.bf16 %v133_v48, %v131_v47  ;;  %v132_v53 = vld [vmem:[#allocation5 + $0x1f0] sm:$0xff]  ;;  %v66_v54 = vld [vmem:[#allocation2 + $0xd0] sm:$0xff]  ;;  %v69_v56 = vld [vmem:[#allocation2 + $0xe8] sm:$0xff] }
  0x43   :  { %498 = vmatpush1.bf16.msra.mxu1 %v497_v55  ;;  %463 = vmatmul.mubr.msk.f32.gmra.mrb[4].mxu0 %vm142_vm0, %v48_v14  ;;  %v533_v55 = vpack.c.bf16 %v132_v53, %v130_v52  ;;  %v40_v57 = vld [vmem:[#allocation2] sm:$0xff]  ;;  %v43_v59 = vld [vmem:[#allocation2 + $0x18] sm:$0xff]  ;;  %v46_v61 = vld [vmem:[#allocation2 + $0x30] sm:$0xff] }
  0x44   :  { %500 = vmatprep.subr.bf16.mxu1 %v499_v58  ;;  %380 = vmatprep.mubr.f32.mxu0 %v649_v0  ;;  %v44_v58 = vld [vmem:[#allocation2 + $0x20] sm:$0xff]  ;;  %v47_v60 = vld [vmem:[#allocation2 + $0x38] sm:$0xff]  ;;  %v50_v62 = vld [vmem:[#allocation2 + $0x50] sm:$0xff] }
  0x45   :  { %v49_v63 = vld [vmem:[#allocation2 + $0x48] sm:$0xff]  ;;  %v55_v3 = vld [vmem:[#allocation2 + $0x78] sm:$0xff]  ;;  %v58_v5 = vld [vmem:[#allocation2 + $0x90] sm:$0xff] }
  0x46   :  { %v59_v4 = vld [vmem:[#allocation2 + $0x98] sm:$0xff]  ;;  %v62_v6 = vld [vmem:[#allocation2 + $0xb0] sm:$0xff]  ;;  %v61_v7 = vld [vmem:[#allocation2 + $0xa8] sm:$0xff] }
  0x47   :  { %502 = vmatpush1.bf16.msra.mxu1 %v501_v1  ;;  %464 = vmatmul.mubr.msk.f32.gmra.mrb[6].mxu0 %vm142_vm0, %v51_v21  ;;  %v53_v1 = vld [vmem:[#allocation2 + $0x68] sm:$0xff]  ;;  %v68_v10 = vld [vmem:[#allocation2 + $0xe0] sm:$0xff]  ;;  %v67_v11 = vld [vmem:[#allocation2 + $0xd8] sm:$0xff] }
  0x48   :  { %504 = vmatprep.subr.bf16.mxu1 %v503_v2  ;;  %386 = vmatprep.mubr.f32.mxu0 %v649_v0  ;;  %v56_v2 = vld [vmem:[#allocation2 + $0x80] sm:$0xff] }
  0x4b   :  { %506 = vmatpush1.bf16.msra.mxu1 %v505_v8  ;;  %465 = vmatmul.mubr.msk.f32.gmra.mrb[8].mxu0 %vm142_vm0, %v54_v28  ;;  %v65_v8 = vld [vmem:[#allocation2 + $0xc8] sm:$0xff] }
  0x4c   :  { %508 = vmatprep.subr.bf16.mxu1 %v507_v9  ;;  %392 = vmatprep.mubr.f32.mxu0 %v649_v0  ;;  %v64_v9 = vld [vmem:[#allocation2 + $0xc0] sm:$0xff] }
  0x4f   :  { %510 = vmatpush1.bf16.msra.mxu1 %v509_v15  ;;  %466 = vmatmul.mubr.msk.f32.gmra.mrb[10].mxu0 %vm142_vm0, %v57_v35 }
  0x50   :  { %512 = vmatprep.subr.bf16.mxu1 %v511_v16  ;;  %398 = vmatprep.mubr.f32.mxu0 %v649_v0 }
  0x53   :  { %514 = vmatpush1.bf16.msra.mxu1 %v513_v22  ;;  %467 = vmatmul.mubr.msk.f32.gmra.mrb[12].mxu0 %vm142_vm0, %v60_v42 }
  0x54   :  { %516 = vmatprep.subr.bf16.mxu1 %v515_v23  ;;  %404 = vmatprep.mubr.f32.mxu0 %v649_v0 }
  0x57   :  { %518 = vmatpush1.bf16.msra.mxu1 %v517_v29  ;;  %468 = vmatmul.mubr.msk.f32.gmra.mrb[14].mxu0 %vm142_vm0, %v63_v49 }
  0x58   :  { %520 = vmatprep.subr.bf16.mxu1 %v519_v30  ;;  %410 = vmatprep.mubr.f32.mxu0 %v649_v0 }
  0x5b   :  { %522 = vmatpush1.bf16.msra.mxu1 %v521_v36  ;;  %469 = vmatmul.mubr.msk.f32.gmra.mrb[16].mxu0 %vm142_vm0, %v66_v54 }
  0x5c   :  { %524 = vmatprep.subr.bf16.mxu1 %v523_v37  ;;  %416 = vmatprep.mubr.f32.mxu0 %v649_v0  ;;  %v52_v0 = vld [vmem:[#allocation2 + $0x60] sm:$0xff] }
  0x5f   :  { %526 = vmatpush1.bf16.msra.mxu1 %v525_v43  ;;  %470 = vmatmul.mubr.msk.f32.gmra.mrb[18].mxu0 %vm142_vm0, %v69_v56 }
  0x60   :  { %528 = vmatprep.subr.bf16.mxu1 %v527_v44 }
  0x63   :  { %530 = vmatpush1.bf16.msra.mxu1 %v529_v50 }
  0x64   :  { %532 = vmatprep.subr.bf16.mxu1 %v531_v51 }
  0x67   :  { %534 = vmatpush1.bf16.msra.mxu1 %v533_v55 }
  0x6a   :  { %238 = vmatmul.mubr.f32.vlgmr.msra.gmra.mrb[0].mxu1 %v40_v57 }
  0x6b   :  { %243 = vmatprep.mubr.f32.mxu1 %v44_v58 }
  0x6e   :  { %244 = vmatmul.mubr.f32.gmra.mrb[2].mxu1 %v43_v59 }
  0x6f   :  { %249 = vmatprep.mubr.f32.mxu1 %v47_v60 }
  0x72   :  { %250 = vmatmul.mubr.f32.gmra.mrb[4].mxu1 %v46_v61 }
  0x73   :  { %255 = vmatprep.mubr.f32.mxu1 %v50_v62 }
  0x76   :  { %256 = vmatmul.mubr.f32.gmra.mrb[6].mxu1 %v49_v63 }
  0x77   :  { %261 = vmatprep.mubr.f32.mxu1 %v53_v1 }
  0x7a   :  { %262 = vmatmul.mubr.f32.gmra.mrb[8].mxu1 %v52_v0 }
  0x7b   :  { %267 = vmatprep.mubr.f32.mxu1 %v56_v2 }
  0x7e   :  { %268 = vmatmul.mubr.f32.gmra.mrb[10].mxu1 %v55_v3 }
  0x7f   :  { %273 = vmatprep.mubr.f32.mxu1 %v59_v4 }
  0x82   :  { %274 = vmatmul.mubr.f32.gmra.mrb[12].mxu1 %v58_v5 }
  0x83   :  { %279 = vmatprep.mubr.f32.mxu1 %v62_v6 }
  0x86   :  { %280 = vmatmul.mubr.f32.gmra.mrb[14].mxu1 %v61_v7 }
  0x87   :  { %285 = vmatprep.mubr.f32.mxu1 %v65_v8 }
  0x8a   :  { %286 = vmatmul.mubr.f32.gmra.mrb[16].mxu1 %v64_v9 }
  0x8b   :  { %291 = vmatprep.mubr.f32.mxu1 %v68_v10 }
  0x8e   :  { %292 = vmatmul.mubr.f32.gmra.mrb[18].mxu1 %v67_v11 }
 0x10e   :  { %v364_v12 = vpop.f32.mrb[0].mxu0 }
 0x10f   :  { %v366_v13 = vpop.f32.mrb[1].mxu0 }
 0x112   :  { %v370_v14 = vpop.f32.mrb[2].mxu0 }
 0x113   :  { %v372_v15 = vpop.f32.mrb[3].mxu0 }
 0x116   :  { %v376_v16 = vpop.f32.mrb[4].mxu0 }
 0x117   :  { %v378_v17 = vpop.f32.mrb[5].mxu0 }
 0x11a   :  { %v382_v18 = vpop.f32.mrb[6].mxu0 }
 0x11b   :  { %v384_v19 = vpop.f32.mrb[7].mxu0 }
 0x11e   :  { %v388_v20 = vpop.f32.mrb[8].mxu0 }
 0x11f   :  { %v390_v21 = vpop.f32.mrb[9].mxu0 }
 0x122   :  { %v394_v22 = vpop.f32.mrb[10].mxu0 }
 0x123   :  { %v396_v23 = vpop.f32.mrb[11].mxu0 }
 0x126   :  { %v400_v24 = vpop.f32.mrb[12].mxu0 }
 0x127   :  { %v402_v25 = vpop.f32.mrb[13].mxu0 }
 0x12a   :  { %v406_v26 = vpop.f32.mrb[14].mxu0 }
 0x12b   :  { %v408_v27 = vpop.f32.mrb[15].mxu0 }
 0x12e   :  { %v412_v28 = vpop.f32.mrb[16].mxu0 }
 0x12f   :  { %v414_v29 = vpop.f32.mrb[17].mxu0 }
 0x132   :  { %v418_v30 = vpop.f32.mrb[18].mxu0 }
 0x133   :  { %v420_v32 = vpop.f32.mrb[19].mxu0 }
 0x13d   :  { %v239_v31 = vpop.f32.mrb[0].mxu1 }
 0x13e   :  { %v365_v33 = vadd.f32 %v364_v12, %v239_v31  ;;  %v241_v34 = vpop.f32.mrb[1].mxu1 }
 0x13f   :  { %v367_v35 = vadd.f32 %v366_v13, %v241_v34 }
 0x140   :  { %423 = vst [vmem:[#allocation7] sm:$0xff] %v365_v33 }
 0x141   :  { %424 = vst [vmem:[#allocation7 + $0x8] sm:$0xff] %v367_v35  ;;  %v245_v36 = vpop.f32.mrb[2].mxu1 }
 0x142   :  { %v371_v37 = vadd.f32 %v370_v14, %v245_v36  ;;  %v247_v38 = vpop.f32.mrb[3].mxu1 }
 0x143   :  { %v373_v39 = vadd.f32 %v372_v15, %v247_v38 }
 0x144   :  { %425 = vst [vmem:[#allocation7 + $0x10] sm:$0xff] %v371_v37 }
 0x145   :  { %426 = vst [vmem:[#allocation7 + $0x18] sm:$0xff] %v373_v39  ;;  %v251_v40 = vpop.f32.mrb[4].mxu1 }
 0x146   :  { %v377_v41 = vadd.f32 %v376_v16, %v251_v40  ;;  %v253_v42 = vpop.f32.mrb[5].mxu1 }
 0x147   :  { %v379_v43 = vadd.f32 %v378_v17, %v253_v42 }
 0x148   :  { %427 = vst [vmem:[#allocation7 + $0x20] sm:$0xff] %v377_v41 }
 0x149   :  { %428 = vst [vmem:[#allocation7 + $0x28] sm:$0xff] %v379_v43  ;;  %v257_v44 = vpop.f32.mrb[6].mxu1 }
 0x14a   :  { %v383_v45 = vadd.f32 %v382_v18, %v257_v44  ;;  %v259_v46 = vpop.f32.mrb[7].mxu1 }
 0x14b   :  { %v385_v47 = vadd.f32 %v384_v19, %v259_v46 }
 0x14c   :  { %429 = vst [vmem:[#allocation7 + $0x30] sm:$0xff] %v383_v45 }
 0x14d   :  { %430 = vst [vmem:[#allocation7 + $0x38] sm:$0xff] %v385_v47  ;;  %v263_v48 = vpop.f32.mrb[8].mxu1 }
 0x14e   :  { %v389_v49 = vadd.f32 %v388_v20, %v263_v48  ;;  %v265_v50 = vpop.f32.mrb[9].mxu1 }
 0x14f   :  { %v391_v51 = vadd.f32 %v390_v21, %v265_v50 }
 0x150   :  { %431 = vst [vmem:[#allocation7 + $0x40] sm:$0xff] %v389_v49 }
 0x151   :  { %432 = vst [vmem:[#allocation7 + $0x48] sm:$0xff] %v391_v51  ;;  %v269_v52 = vpop.f32.mrb[10].mxu1 }
 0x152   :  { %v395_v53 = vadd.f32 %v394_v22, %v269_v52  ;;  %v271_v54 = vpop.f32.mrb[11].mxu1 }
 0x153   :  { %v397_v55 = vadd.f32 %v396_v23, %v271_v54 }
 0x154   :  { %433 = vst [vmem:[#allocation7 + $0x50] sm:$0xff] %v395_v53 }
 0x155   :  { %434 = vst [vmem:[#allocation7 + $0x58] sm:$0xff] %v397_v55  ;;  %v275_v56 = vpop.f32.mrb[12].mxu1 }
 0x156   :  { %v401_v57 = vadd.f32 %v400_v24, %v275_v56  ;;  %v277_v58 = vpop.f32.mrb[13].mxu1 }
 0x157   :  { %v403_v59 = vadd.f32 %v402_v25, %v277_v58 }
 0x158   :  { %435 = vst [vmem:[#allocation7 + $0x60] sm:$0xff] %v401_v57 }
 0x159   :  { %436 = vst [vmem:[#allocation7 + $0x68] sm:$0xff] %v403_v59  ;;  %v281_v60 = vpop.f32.mrb[14].mxu1 }
 0x15a   :  { %v407_v61 = vadd.f32 %v406_v26, %v281_v60  ;;  %v283_v62 = vpop.f32.mrb[15].mxu1 }
 0x15b   :  { %v409_v63 = vadd.f32 %v408_v27, %v283_v62 }
 0x15c   :  { %437 = vst [vmem:[#allocation7 + $0x70] sm:$0xff] %v407_v61 }
 0x15d   :  { %438 = vst [vmem:[#allocation7 + $0x78] sm:$0xff] %v409_v63  ;;  %v287_v1 = vpop.f32.mrb[16].mxu1 }
 0x15e   :  { %v413_v0 = vadd.f32 %v412_v28, %v287_v1  ;;  %v289_v2 = vpop.f32.mrb[17].mxu1 }
 0x15f   :  { %v415_v3 = vadd.f32 %v414_v29, %v289_v2 }
 0x160   :  { %439 = vst [vmem:[#allocation7 + $0x80] sm:$0xff] %v413_v0 }
 0x161   :  { %440 = vst [vmem:[#allocation7 + $0x88] sm:$0xff] %v415_v3  ;;  %v293_v4 = vpop.f32.mrb[18].mxu1 }
 0x162   :  { %v419_v5 = vadd.f32 %v418_v30, %v293_v4  ;;  %v295_v6 = vpop.f32.mrb[19].mxu1 }
 0x163   :  { %v421_v7 = vadd.f32 %v420_v32, %v295_v6 }
 0x164   :  { %441 = vst [vmem:[#allocation7 + $0x90] sm:$0xff] %v419_v5 }
 0x165   :  { %442 = vst [vmem:[#allocation7 + $0x98] sm:$0xff] %v421_v7 }
 0x166   :  { %626 = shalt.err (!%p623_p6)
}
 0x167   :  { %s627_s12 = scalar_lea.hbm %s730_s2, 2560 }
 0x168   :  { %p628_p7 = scmp.ne.s32.totalorder %s730_s2, %s627_s12  ;;  %p631_p8 = scmp.lt.u32.totalorder %s627_s12, %s730_s2 }
 0x16a   :  { %p633_p9 = pnand %p631_p8, %p628_p7 }
 0x16c   :  { %636 = shalt.err (!%p633_p9)
}
 0x16d   :  { %454 = dma.vmem_to_hbm [thread:$0]  %s449_s8, 2560, %s730_s2, [#allocation4], %s647_s0, %s647_s0, %s648_s5  }
 0x16e   :  { %641 = dma.done.wait [#allocation4], 2560  }
 0x16f   :  { %642 = vsyncadd [#allocation4], 4294964736 }
 0x170   :  { %458 = vsyncpa [#allocation3], 1 }
 0x171   :  { %459 = vsyncpa [#allocation6], 1 }
 0x172   :  { %460 = vsyncpa [#allocation4], 1 }

</bundles_post_ra>
